<compile_context>
chip_gen: v6e
topology: v6e:2x2x1
jax: 0.10.0
libtpu: 0.0.40
codegen_flags: <defaults>
</compile_context>

<pallas_src>
import functools

import jax
import jax.numpy as jnp
import numpy as np
from jax.experimental import pallas as pl
from jax.experimental.pallas import tpu as pltpu


def _avgpool2x2_matmul_kernel(x_ref, p_ref, o_ref, *, precision):
    # x_ref: (TR, 2*G*W)   TR kernel rows, each holding 2*G consecutive image rows
    # p_ref: (2*G*W, G*Wo) constant pooling matrix (0.25 at the 4 taps of each window)
    # o_ref: (TR, G*Wo)
    o_ref[...] = jnp.dot(
        x_ref[...],
        p_ref[...],
        precision=precision,
        preferred_element_type=jnp.float32,   # accumulate in float32 on the MXU
    ).astype(o_ref.dtype)


def _divisors(n: int):
    ds = set()
    i = 1
    while i * i <= n:
        if n % i == 0:
            ds.add(i)
            ds.add(n // i)
        i += 1
    return sorted(ds)


def _pick_group(mho: int, w: int, wo: int, itemsize: int,
                p_cap: int = 4 << 20, row_cap: int = 2 << 20) -> int:
    """Pick G | N*C*Ho so the output row width G*Wo is lane-dense (>=128), preferring an
    exact multiple of 128 lanes, while keeping P and a single kernel row small."""
    ok = [g for g in _divisors(mho)
          if 2 * g * w * itemsize <= row_cap
          and 2 * g * w * g * wo * itemsize <= p_cap]
    dense = [g for g in ok if g * wo >= 128]
    if dense:
        for g in dense:                      # prefer unmasked (multiple-of-128) stores
            if (g * wo) % 128 == 0:
                return g
        return dense[0]
    if ok:
        return ok[-1]                        # widest row that fits (tiny feature maps)
    return 1


@jax.jit
def transition_forward(x):
    """_Transition.forward == nn.AvgPool2d(kernel_size=2, stride=2) on NCHW input."""
    n, c, h, w = x.shape
    if h % 2 or w % 2:
        raise ValueError("H and W must be even (AvgPool2d(2,2), ceil_mode=False)")
    ho, wo = h // 2, w // 2
    m = n * c
    itemsize = jnp.dtype(x.dtype).itemsize

    g = _pick_group(m * ho, w, wo, itemsize)
    k = 2 * g * w                 # input row width  (lane axis): 2*G image rows
    n_out = g * wo                # output row width (lane axis): G pooled rows
    r = (m * ho) // g             # number of kernel rows

    # Contiguous reinterpretation of NCHW (no HBM copy): each row = 2*G image rows.
    xf = x.reshape(r, k)

    # Constant pooling matrix: P[ki, ji] = 0.25 iff input element ki is one of the four
    # taps of output element ji (0.25 is exact in f32/bf16, so pre-scaling the taps is
    # equivalent to scaling after the window sum).
    ki = np.arange(k)
    ji = np.arange(n_out)
    row_in, col_in = ki // w, ki % w
    row_out, col_out = ji // wo, ji % wo
    p = ((row_in[:, None] // 2 == row_out[None, :])
         & (col_in[:, None] // 2 == col_out[None, :])).astype(np.float32) * 0.25
    p = jnp.asarray(p, dtype=x.dtype)

    # Row tile: ~4 MiB of input per block, multiple of 8 sublanes; keep >= 2 grid steps
    # when possible so the "parallel" axis can shard across v7x's two TensorCores.
    tr = max(8, ((4 << 20) // (k * itemsize)) // 8 * 8)
    if r >= 16:
        tr = min(tr, (((r + 1) // 2) + 7) // 8 * 8)
    tr = min(tr, r)
    grid = (pl.cdiv(r, tr),)

    precision = (jax.lax.Precision.HIGHEST if x.dtype == jnp.float32
                 else jax.lax.Precision.DEFAULT)

    out = pl.pallas_call(
        functools.partial(_avgpool2x2_matmul_kernel, precision=precision),
        out_shape=jax.ShapeDtypeStruct((r, n_out), x.dtype),
        grid=grid,
        in_specs=[
            pl.BlockSpec((tr, k), lambda i: (i, 0)),      # row tile of the input
            pl.BlockSpec((k, n_out), lambda i: (0, 0)),   # P: resident across the grid
        ],
        out_specs=pl.BlockSpec((tr, n_out), lambda i: (i, 0)),
        compiler_params=pltpu.CompilerParams(
            dimension_semantics=("parallel",),
            vmem_limit_bytes=32 * 1024 * 1024,
        ),
        cost_estimate=pl.CostEstimate(
            flops=2 * r * k * n_out,
            transcendentals=0,
            bytes_accessed=(r * k + r * n_out + k * n_out) * itemsize,
        ),
    )(xf, p)

    # Contiguous reinterpretation back to pooled NCHW (no HBM copy).
    return out.reshape(n, c, ho, wo)


if __name__ == "__main__":
    key = jax.random.PRNGKey(0)
    # NCHW input, small shape consistent with the module's forward.
    x = jax.random.normal(key, (2, 4, 16, 16), dtype=jnp.float32)

    y = jax.block_until_ready(transition_forward(x))
    ref = x.reshape(2, 4, 8, 2, 8, 2).mean(axis=(3, 5))
    assert y.shape == (2, 4, 8, 8), y.shape
    assert jnp.allclose(y, ref, atol=1e-5, rtol=1e-5), float(jnp.max(jnp.abs(y - ref)))

    # Second (odd-sized) shape exercising the cross-channel row-grouping path.
    x2 = jax.random.normal(jax.random.PRNGKey(1), (1, 3, 8, 12), dtype=jnp.float32)
    y2 = jax.block_until_ready(transition_forward(x2))
    ref2 = x2.reshape(1, 3, 4, 2, 6, 2).mean(axis=(3, 5))
    assert jnp.allclose(y2, ref2, atol=1e-5, rtol=1e-5), float(jnp.max(jnp.abs(y2 - ref2)))

    print("KERNEL_OK")
</pallas_src>

<mosaic_0001>
module attributes {stable_mosaic.version = 11 : i64} {
  func.func @_avgpool2x2_matmul_kernel(%arg0: i32, %arg1: memref<4x512xf32, #tpu.memory_space<vmem>>, %arg2: memref<512x128xf32, #tpu.memory_space<vmem>>, %arg3: memref<4x128xf32, #tpu.memory_space<vmem>>) attributes {dimension_semantics = [#tpu.dimension_semantics<parallel>], iteration_bounds = array<i64: 1>, scalar_prefetch = 0 : i64, scratch_operands = 0 : i64, tpu.core_type = #tpu.core_type<tc>, window_params = [{transform_indices = @transform_0, window_bounds = array<i64: 4, 512>}, {pipeline_mode = #tpu.pipeline_mode<synchronous>, transform_indices = @transform_1, window_bounds = array<i64: 512, 128>}, {transform_indices = @transform_2, window_bounds = array<i64: 4, 128>}]} {
    %c0 = arith.constant 0 : index
    %c0_0 = arith.constant 0 : index
    %0 = vector.load %arg1[%c0, %c0_0] : memref<4x512xf32, #tpu.memory_space<vmem>>, vector<4x512xf32>
    %c0_1 = arith.constant 0 : index
    %c0_2 = arith.constant 0 : index
    %1 = vector.load %arg2[%c0_1, %c0_2] : memref<512x128xf32, #tpu.memory_space<vmem>>, vector<512x128xf32>
    %cst = arith.constant dense<0.000000e+00> : vector<4x128xf32>
    %2 = tpu.matmul %0, %1, %cst {dimension_numbers = #tpu.dot_dimension_numbers<[1], [0], [0], [1], [0, 0, 1, 1], [], []>, precision = #tpu.contract_precision<fp32>} : vector<4x512xf32>, vector<512x128xf32>, vector<4x128xf32> -> vector<4x128xf32>
    %c0_3 = arith.constant 0 : index
    %c0_4 = arith.constant 0 : index
    %3 = vector.load %arg3[%c0_3, %c0_4] : memref<4x128xf32, #tpu.memory_space<vmem>>, vector<4x128xf32>
    tpu.vector_store %arg3[%c0_3, %c0_4], %2 {strides = array<i32>} : memref<4x128xf32, #tpu.memory_space<vmem>>, vector<4x128xf32>,
    return
  }
  func.func @transform_0(%arg0: i32) -> (i32, i32) {
    %c0_i32 = arith.constant 0 : i32
    %c0_i32_0 = arith.constant 0 : i32
    return %arg0, %c0_i32 : i32, i32
  }
  func.func @transform_1(%arg0: i32) -> (i32, i32) {
    %c0_i32 = arith.constant 0 : i32
    %c0_i32_0 = arith.constant 0 : i32
    %c0_i32_1 = arith.constant 0 : i32
    return %c0_i32, %c0_i32_0 : i32, i32
  }
  func.func @transform_2(%arg0: i32) -> (i32, i32) {
    %c0_i32 = arith.constant 0 : i32
    %c0_i32_0 = arith.constant 0 : i32
    return %arg0, %c0_i32 : i32, i32
  }
}

</mosaic_0001>

<bundles_post_ra>
// kernel: transition_forward.1
= control target key start
LH: loop header
LB: loop body
LE: loop exit
PB: predicated region body
PF: predicated region fallthrough
CT: control target
= control target key end

     0   :  { %7 = vsyncpa [#allocation3], 0  ;;  %s2274_s9 = smov [#allocation2]   ;;  %s3491_s0 = inlined_call_operand.vmem [shape: f32[4,512], index: 0, kind: input, shape index: {}]   ;;  %s3492_s1 = inlined_call_operand.hbm [shape: f32[512,128], index: 1, kind: input, shape index: {}]   ;;  %s3493_s2 = inlined_call_operand.vmem [shape: f32[4,128], index: 2, kind: output, shape index: {}]  }
   0x1   :  { %s15_s10 = sshll.u32 %s2274_s9, 4  ;;  %s16_s10 = int_to_ptr.vmem [resolvable:$true] %s15_s10 }
   0x2   :  { %s2260_s11 = scalar_lea.vmem %s16_s10, 8192  ;;  %p2265_p1 = scmp.lt.s32.totalorder %s16_s10, %s16_s10 }
   0x3   :  { %p2261_p0 = scmp.ne.s32.totalorder %s16_s10, %s2260_s11  ;;  %p2266_p2 = scmp.lt.s32.totalorder %s2260_s11, %s2260_s11 }
   0x5   :  { %p2267_p3 = por %p2266_p2, %p2265_p1 }
   0x7   :  { %p2268_p4 = pnand %p2267_p3, %p2261_p0 }
   0x9   :  { %2271 = shalt.err (!%p2268_p4)
}
   0xa   :  { %s2275_s12 = smov 128   ;;  %s2276_s13 = smov 8  }
   0xb   :  { %21 = dma.hbm_to_vmem [thread:$0]  %s3492_s1, 8192, %s16_s10, [#allocation3], %s2275_s12, %s2275_s12, %s2276_s13  }
   0xc   :  { %2272 = dma.done.wait [#allocation3], 8192  }
   0xd   :  { %2273 = vsyncadd [#allocation3], 4294959104  ;;  %v58_v0 = vld [vmem:[#allocation2 + $0xf8] sm:$0xff]  ;;  %v57_v2 = vld [vmem:[#allocation2 + $0xf0] sm:$0xff] }
   0xe   :  { %v42_v1 = vld [vmem:[#allocation2 + $0x78] sm:$0xff]  ;;  %v2295_v3 = vand.u32 4294901760, %v58_v0  ;;  %v2299_v5 = vand.u32 4294901760, %v57_v2  ;;  %v41_v6 = vld [vmem:[#allocation2 + $0x70] sm:$0xff]  ;;  %v56_v7 = vld [vmem:[#allocation2 + $0xe8] sm:$0xff] }
   0xf   :  { %v2297_v4 = vand.u32 4294901760, %v42_v1  ;;  %v40_v8 = vld [vmem:[#allocation2 + $0x68] sm:$0xff]  ;;  %v2301_v9 = vand.u32 4294901760, %v41_v6  ;;  %v2303_v10 = vand.u32 4294901760, %v56_v7  ;;  %v55_v12 = vld [vmem:[#allocation2 + $0xe0] sm:$0xff]  ;;  %v54_v14 = vld [vmem:[#allocation2 + $0xd8] sm:$0xff] }
  0x10   :  { %v2305_v11 = vand.u32 4294901760, %v40_v8  ;;  %v39_v13 = vld [vmem:[#allocation2 + $0x60] sm:$0xff]  ;;  %1827 = vmatprep.subr.mxu0 %v2295_v3  ;;  %v2308_v15 = vand.u32 4294901760, %v55_v12  ;;  %v2312_v17 = vand.u32 4294901760, %v54_v14  ;;  %v2315_v18 = vsub.f32 %v58_v0, %v2295_v3  ;;  %v2317_v19 = vld [vmem:[#allocation2 + $0x58] sm:$0xff]  ;;  %v2319_v20 = vld [vmem:[#allocation2 + $0xd0] sm:$0xff] }
  0x11   :  { %v2310_v16 = vand.u32 4294901760, %v39_v13  ;;  %v2321_v21 = vld [vmem:[#allocation2 + $0x50] sm:$0xff]  ;;  %1828 = vmatpush3.msra.mxu0 %v2297_v4  ;;  %v2325_v22 = vand.u32 4294901760, %v2317_v19  ;;  %v2328_v23 = vsub.f32 %v42_v1, %v2297_v4  ;;  %v2331_v24 = vand.u32 4294901760, %v2319_v20  ;;  %v2336_v26 = vld [vmem:[#allocation2 + $0xc8] sm:$0xff]  ;;  %v2340_v28 = vld [vmem:[#allocation2 + $0xc0] sm:$0xff] }
  0x12   :  { %v2334_v25 = vsub.f32 %v57_v2, %v2299_v5  ;;  %v2338_v27 = vld [vmem:[#allocation2 + $0x48] sm:$0xff]  ;;  %1829 = vmatprep.subr.mxu0 %v2299_v5  ;;  %v3507_v29 = vand.u32 4294901760, %v2315_v18  ;;  %v2345_v30 = vand.u32 4294901760, %v2321_v21  ;;  %v2348_v31 = vsub.f32 %v41_v6, %v2301_v9  ;;  %v2362_v37 = vld [vmem:[#allocation2 + $0x40] sm:$0xff]  ;;  %v2386_v46 = vld [vmem:[#allocation2 + $0xb8] sm:$0xff] }
  0x13   :  { %v2351_v32 = vand.u32 4294901760, %v2336_v26  ;;  %1830 = vmatpush3.msra.mxu0 %v2301_v9  ;;  %v3505_v33 = vand.u32 4294901760, %v2328_v23  ;;  %v2357_v35 = vsub.f32 %v56_v7, %v2303_v10  ;;  %v2360_v36 = vand.u32 4294901760, %v2338_v27  ;;  %v2396_v51 = vld [vmem:[#allocation2 + $0x38] sm:$0xff]  ;;  %v2403_v56 = vld [vmem:[#allocation2 + $0xb0] sm:$0xff]  ;;  %v2427_v2 = vld [vmem:[#allocation2 + $0xa8] sm:$0xff] }
  0x14   :  { %3630 = vst [vmem:[#allocation5_spill] sm:$0xff] %v2345_v30  ;;  %v3504_v34 = vand.u32 4294901760, %v2334_v25  ;;  %1831 = vmatprep.subr.mxu0 %v2303_v10  ;;  %v325_v38 = vsub.f32 %v2315_v18, %v3507_v29  ;;  %v3502_v39 = vand.u32 4294901760, %v2348_v31  ;;  %v2370_v40 = vsub.f32 %v40_v8, %v2305_v11  ;;  %v2415_v61 = vld [vmem:[#allocation2 + $0x30] sm:$0xff] }
  0x15   :  { %3631 = vst [vmem:[#allocation6_spill] sm:$0xff] %v2351_v32  ;;  %3632 = vst [vmem:[#allocation7_spill] sm:$0xff] %v2360_v36  ;;  %v2373_v41 = vand.u32 4294901760, %v2340_v28  ;;  %1832 = vmatpush3.msra.mxu0 %v2305_v11  ;;  %v213_v42 = vsub.f32 %v2328_v23, %v3505_v33  ;;  %v3500_v44 = vand.u32 4294901760, %v2357_v35  ;;  %v2384_v45 = vsub.f32 %v55_v12, %v2308_v15 }
  0x16   :  { %v332_v43 = vsub.f32 %v2334_v25, %v3504_v34  ;;  %1833 = vmatprep.subr.mxu0 %v2308_v15  ;;  %v326_v47 = vand.u32 4294901760, %v325_v38  ;;  %v220_v48 = vsub.f32 %v2348_v31, %v3502_v39  ;;  %v3499_v49 = vand.u32 4294901760, %v2370_v40  ;;  %v2518_v39 = vld [vmem:[#allocation2 + $0x90] sm:$0xff] }
  0x17   :  { %3633 = vst [vmem:[#allocation8_spill] sm:$0xff] %v2373_v41  ;;  %v2394_v50 = vand.u32 4294901760, %v2362_v37  ;;  %1834 = vmatpush3.msra.mxu0 %v2310_v16  ;;  %v214_v52 = vand.u32 4294901760, %v213_v42  ;;  %v339_v54 = vsub.f32 %v2357_v35, %v3500_v44  ;;  %v3497_v55 = vand.u32 4294901760, %v2384_v45  ;;  %v2528_v34 = vld [vmem:[#allocation2 + $0x10] sm:$0xff] }
  0x18   :  { %v333_v53 = vand.u32 4294901760, %v332_v43  ;;  %1835 = vmatprep.subr.mxu0 %v2312_v17  ;;  %1862 = vmatprep.subr.mxu1 %v326_v47  ;;  %v221_v57 = vand.u32 4294901760, %v220_v48  ;;  %v227_v58 = vsub.f32 %v2370_v40, %v3499_v49  ;;  %v2410_v59 = vsub.f32 %v39_v13, %v2310_v16  ;;  %v2438_v13 = vld [vmem:[#allocation2 + $0x28] sm:$0xff]  ;;  %v2505_v49 = vld [vmem:[#allocation2 + $0x18] sm:$0xff] }
  0x19   :  { %3634 = vst [vmem:[#allocation9_spill] sm:$0xff] %v2394_v50  ;;  %v2413_v60 = vand.u32 4294901760, %v2386_v46  ;;  %1836 = vmatpush3.msra.mxu0 %v2325_v22  ;;  %1863 = vmatpush3.msra.mxu1 %v214_v52  ;;  %v340_v62 = vand.u32 4294901760, %v339_v54  ;;  %v346_v63 = vsub.f32 %v2384_v45, %v3497_v55  ;;  %v2422_v0 = vsub.f32 %v54_v14, %v2312_v17 }
  0x1a   :  { %v2425_v1 = vand.u32 4294901760, %v2396_v51  ;;  %1837 = vmatprep.subr.mxu0 %v2331_v24  ;;  %1864 = vmatprep.subr.mxu1 %v333_v53  ;;  %v228_v6 = vand.u32 4294901760, %v227_v58  ;;  %v3495_v7 = vand.u32 4294901760, %v2410_v59  ;;  %v2433_v8 = vsub.f32 %v2317_v19, %v2325_v22 }
  0x1b   :  { %3635 = vst [vmem:[#allocation10_spill] sm:$0xff] %v2413_v60  ;;  %v2436_v12 = vand.u32 4294901760, %v2403_v56  ;;  %1838 = vmatpush3.msra.mxu0 %v2345_v30  ;;  %1865 = vmatpush3.msra.mxu1 %v221_v57  ;;  %v347_v14 = vand.u32 4294901760, %v346_v63  ;;  %v3494_v38 = vand.u32 4294901760, %v2422_v0  ;;  %v2444_v42 = vsub.f32 %v2319_v20, %v2331_v24  ;;  %v2461_v20 = vld [vmem:[#allocation2 + $0xa0] sm:$0xff] }
  0x1c   :  { %3636 = vst [vmem:[#allocation11_spill] sm:$0xff] %v2425_v1  ;;  %v2447_v43 = vand.u32 4294901760, %v2415_v61  ;;  %1839 = vmatprep.subr.mxu0 %v2351_v32  ;;  %1866 = vmatprep.subr.mxu1 %v340_v62  ;;  %v234_v19 = vsub.f32 %v2410_v59, %v3495_v7  ;;  %v3496_v47 = vand.u32 4294901760, %v2433_v8  ;;  %v2456_v48 = vsub.f32 %v2321_v21, %v2345_v30 }
  0x1d   :  { %3637 = vst [vmem:[#allocation12_spill] sm:$0xff] %v2436_v12  ;;  %v2459_v52 = vand.u32 4294901760, %v2427_v2  ;;  %1840 = vmatpush3.msra.mxu0 %v2360_v36  ;;  %1867 = vmatpush3.msra.mxu1 %v228_v6  ;;  %v353_v53 = vsub.f32 %v2422_v0, %v3494_v38  ;;  %v3498_v54 = vand.u32 4294901760, %v2444_v42  ;;  %v2470_v57 = vsub.f32 %v2336_v26, %v2351_v32  ;;  %v2484_v38 = vld [vmem:[#allocation2 + $0x20] sm:$0xff] }
  0x1e   :  { %3638 = vst [vmem:[#allocation13_spill] sm:$0xff] %v2447_v43  ;;  %v2473_v21 = vand.u32 4294901760, %v2438_v13  ;;  %1841 = vmatprep.subr.mxu0 %v2373_v41  ;;  %1868 = vmatprep.subr.mxu1 %v347_v14  ;;  %v235_v58 = vand.u32 4294901760, %v234_v19  ;;  %v241_v62 = vsub.f32 %v2433_v8, %v3496_v47  ;;  %v3501_v63 = vand.u32 4294901760, %v2456_v48  ;;  %v2494_v47 = vld [vmem:[#allocation2 + $0x98] sm:$0xff] }
  0x1f   :  { %3639 = vst [vmem:[#allocation14_spill] sm:$0xff] %v2459_v52  ;;  %v2482_v6 = vsub.f32 %v2338_v27, %v2360_v36  ;;  %1842 = vmatpush3.msra.mxu0 %v2394_v50  ;;  %v354_v26 = vand.u32 4294901760, %v353_v53  ;;  %v360_v14 = vsub.f32 %v2444_v42, %v3498_v54  ;;  %v3503_v19 = vand.u32 4294901760, %v2470_v57 }
  0x20   :  { %3640 = vst [vmem:[#allocation15_spill] sm:$0xff] %v2473_v21  ;;  %v2492_v7 = vand.u32 4294901760, %v2461_v20  ;;  %1869 = vmatpush3.msra.mxu1 %v235_v58  ;;  %1843 = vmatprep.subr.mxu0 %v2413_v60  ;;  %v242_v27 = vand.u32 4294901760, %v241_v62  ;;  %v248_v55 = vsub.f32 %v2456_v48, %v3501_v63  ;;  %v2503_v54 = vsub.f32 %v2340_v28, %v2373_v41 }
  0x21   :  { %v3506_v53 = vand.u32 4294901760, %v2482_v6  ;;  %1870 = vmatprep.subr.mxu1 %v354_v26  ;;  %1844 = vmatpush3.msra.mxu0 %v2425_v1  ;;  %v361_v44 = vand.u32 4294901760, %v360_v14  ;;  %v367_v58 = vsub.f32 %v2470_v57, %v3503_v19  ;;  %v2512_v62 = vand.u32 4294901760, %v2484_v38 }
  0x22   :  { %3641 = vst [vmem:[#allocation16_spill] sm:$0xff] %v2492_v7  ;;  %v2516_v63 = vsub.f32 %v2362_v37, %v2394_v50  ;;  %1871 = vmatpush3.msra.mxu1 %v242_v27  ;;  %1845 = vmatprep.subr.mxu0 %v2436_v12  ;;  %v249_v28 = vand.u32 4294901760, %v248_v55  ;;  %v3510_v14 = vand.u32 4294901760, %v2503_v54  ;;  %v2526_v19 = vand.u32 4294901760, %v2494_v47 }
  0x23   :  { %3642 = vst [vmem:[#allocation17_spill] sm:$0xff] %v2512_v62  ;;  %v255_v26 = vsub.f32 %v2482_v6, %v3506_v53  ;;  %1872 = vmatprep.subr.mxu1 %v361_v44  ;;  %1846 = vmatpush3.msra.mxu0 %v2447_v43  ;;  %v368_v37 = vand.u32 4294901760, %v367_v58  ;;  %v2534_v55 = vsub.f32 %v2386_v46, %v2413_v60  ;;  %v2537_v33 = vand.u32 4294901760, %v2505_v49  ;;  %v2539_v53 = vld [vmem:[#allocation2 + $0x88] sm:$0xff] }
  0x24   :  { %3643 = vst [vmem:[#allocation18_spill] sm:$0xff] %v2526_v19  ;;  %v3513_v27 = vand.u32 4294901760, %v2516_v63  ;;  %1873 = vmatpush3.msra.mxu1 %v249_v28  ;;  %1847 = vmatprep.subr.mxu0 %v2459_v52  ;;  %v374_v44 = vsub.f32 %v2503_v54, %v3510_v14  ;;  %v2547_v58 = vsub.f32 %v2396_v51, %v2425_v1  ;;  %v2550_v46 = vand.u32 4294901760, %v2518_v39  ;;  %v2564_v51 = vld [vmem:[#allocation2 + $0x8] sm:$0xff] }
  0x25   :  { %3644 = vst [vmem:[#allocation19_spill] sm:$0xff] %v2537_v33  ;;  %v256_v29 = vand.u32 4294901760, %v255_v26  ;;  %1874 = vmatprep.subr.mxu1 %v368_v37  ;;  %1848 = vmatpush3.msra.mxu0 %v2473_v21  ;;  %v2559_v60 = vsub.f32 %v2403_v56, %v2436_v12  ;;  %v2562_v14 = vand.u32 4294901760, %v2528_v34  ;;  %v2573_v26 = vand.u32 4294901760, %v2539_v53  ;;  %v2575_v56 = vld [vmem:[#allocation2 + $0x80] sm:$0xff] }
  0x26   :  { %3645 = vst [vmem:[#allocation20_spill] sm:$0xff] %v2550_v46  ;;  %v262_v28 = vsub.f32 %v2516_v63, %v3513_v27  ;;  %1849 = vmatprep.subr.mxu0 %v2492_v7  ;;  %v375_v37 = vand.u32 4294901760, %v374_v44  ;;  %v2570_v27 = vsub.f32 %v2415_v61, %v2447_v43  ;;  %v3649_v50 = vand.u32 4294901760, %v2534_v55  ;;  %v2598_v44 = vld [vmem:[#allocation2] sm:$0xff] }
  0x27   :  { %3646 = vst [vmem:[#allocation21_spill] sm:$0xff] %v2562_v14  ;;  %1875 = vmatpush3.msra.mxu1 %v256_v29  ;;  %3648 = vst [vmem:[#allocation23_spill] sm:$0xff] %v2573_v26  ;;  %1850 = vmatpush3.msra.mxu0 %v2512_v62  ;;  %v2584_v1 = vsub.f32 %v2427_v2, %v2459_v52  ;;  %v3651_v61 = vand.u32 4294901760, %v2547_v58  ;;  %v2606_v41 = vand.u32 4294901760, %v2575_v56  ;;  %v2625_v30 = vand.u32 4294901760, %v2598_v44 }
  0x28   :  { %3647 = vst [vmem:[#allocation22_spill] sm:$0xff] %v2570_v27  ;;  %v263_v12 = vand.u32 4294901760, %v262_v28  ;;  %v381_v29 = vsub.f32 %v2534_v55, %v3649_v50  ;;  %1876 = vmatprep.subr.mxu1 %v375_v37  ;;  %1851 = vmatprep.subr.mxu0 %v2526_v19  ;;  %v2592_v28 = vand.u32 4294901760, %v2564_v51  ;;  %v2596_v50 = vsub.f32 %v2438_v13, %v2473_v21  ;;  %v25_v13 = vld [vmem:[%s3491_s0] sm:$0xff] }
  0x29   :  { %3650 = vst [vmem:[#allocation24_spill] sm:$0xff] %v2584_v1  ;;  %v269_v43 = vsub.f32 %v2547_v58, %v3651_v61  ;;  %1852 = vmatpush3.msra.mxu0 %v2537_v33  ;;  %v3653_v37 = vand.u32 4294901760, %v2559_v60  ;;  %v3655_v32 = vand.u32 4294901760, %v2584_v1 }
  0x2a   :  { %3652 = vst [vmem:[#allocation25_spill] sm:$0xff] %v2592_v28  ;;  %1877 = vmatpush3.msra.mxu1 %v263_v12  ;;  %v382_v2 = vand.u32 4294901760, %v381_v29  ;;  %1853 = vmatprep.subr.mxu0 %v2550_v46  ;;  %v3654_v12 = vand.u32 4294901760, %v2570_v27 }
  0x2b   :  { %v388_v52 = vsub.f32 %v2559_v60, %v3653_v37  ;;  %v270_v21 = vand.u32 4294901760, %v269_v43  ;;  %v2618_v37 = vsub.f32 %v2461_v20, %v2492_v7  ;;  %1854 = vmatpush3.msra.mxu0 %v2562_v14  ;;  %v395_v43 = vsub.f32 %v2584_v1, %v3655_v32 }
  0x2c   :  { %v276_v29 = vsub.f32 %v2570_v27, %v3654_v12  ;;  %1878 = vmatprep.subr.mxu1 %v382_v2  ;;  %v2629_v12 = vsub.f32 %v2484_v38, %v2512_v62  ;;  %1855 = vmatprep.subr.mxu0 %v2573_v26  ;;  %v3656_v20 = vand.u32 4294901760, %v2596_v50  ;;  %v93_v7 = vcombine.high %v25_v13, %v25_v13 }
  0x2d   :  { %v389_v61 = vand.u32 4294901760, %v388_v52  ;;  %1879 = vmatpush3.msra.mxu1 %v270_v21  ;;  %v3538_v2 = vand.u32 4294901760, %v2618_v37  ;;  %v396_v32 = vand.u32 4294901760, %v395_v43  ;;  %1856 = vmatpush3.msra.mxu0 %v2592_v28  ;;  %v2638_v27 = vand.u32 4294901760, %v25_v13 }
  0x2e   :  { %v277_v36 = vand.u32 4294901760, %v276_v29  ;;  %v283_v52 = vsub.f32 %v2596_v50, %v3656_v20  ;;  %v3539_v1 = vand.u32 4294901760, %v2629_v12  ;;  %v2642_v38 = vsub.f32 %v2494_v47, %v2526_v19  ;;  %1857 = vmatprep.subr.mxu0 %v2606_v41 }
  0x2f   :  { %1880 = vmatprep.subr.mxu1 %v389_v61  ;;  %3657 = vst [vmem:[#allocation26_spill] sm:$0xff] %v2638_v27  ;;  %v402_v29 = vsub.f32 %v2618_v37, %v3538_v2  ;;  %v2648_v61 = vand.u32 4294901760, %v93_v7  ;;  %v2652_v43 = vsub.f32 %v2505_v49, %v2537_v33  ;;  %1858 = vmatpush3.msra.mxu0 %v2625_v30 }
  0x30   :  { %1881 = vmatpush3.msra.mxu1 %v277_v36  ;;  %v284_v21 = vand.u32 4294901760, %v283_v52  ;;  %v290_v36 = vsub.f32 %v2629_v12, %v3539_v1  ;;  %v2660_v20 = vsub.f32 %v25_v13, %v2638_v27  ;;  %v2664_v52 = vsub.f32 %v2518_v39, %v2550_v46  ;;  %1897 = vmatprep.subr.mxu0 %v2315_v18 }
  0x31   :  { %3658 = vst [vmem:[#allocation27_spill] sm:$0xff] %v2648_v61  ;;  %1882 = vmatprep.subr.mxu1 %v396_v32  ;;  %v403_v2 = vand.u32 4294901760, %v402_v29  ;;  %v2667_v49 = vsub.f32 %v93_v7, %v2648_v61  ;;  %v3544_v32 = vand.u32 4294901760, %v2652_v43  ;;  %v2673_v1 = vsub.f32 %v2528_v34, %v2562_v14  ;;  %434 = vmatprep.mubr.f32.mxu1 %v2648_v61 }
  0x32   :  { %1883 = vmatpush3.msra.mxu1 %v284_v21  ;;  %v291_v47 = vand.u32 4294901760, %v290_v36  ;;  %v3659_v13 = vand.u32 4294901760, %v2642_v38  ;;  %v3547_v39 = vand.u32 4294901760, %v2660_v20  ;;  %v2688_v36 = vsub.f32 %v2539_v53, %v2573_v26 }
  0x33   :  { %1884 = vmatprep.subr.mxu1 %v403_v2  ;;  %v297_v29 = vsub.f32 %v2652_v43, %v3544_v32  ;;  %v3660_v2 = vand.u32 4294901760, %v2664_v52  ;;  %v2698_v61 = vsub.f32 %v2564_v51, %v2592_v28  ;;  %v3661_v32 = vand.u32 4294901760, %v2667_v49 }
  0x34   :  { %v409_v33 = vsub.f32 %v2642_v38, %v3659_v13  ;;  %1885 = vmatpush3.msra.mxu1 %v291_v47  ;;  %v202_v21 = vsub.f32 %v2660_v20, %v3547_v39  ;;  %v3662_v47 = vand.u32 4294901760, %v2673_v1  ;;  %v3557_v26 = vand.u32 4294901760, %v2688_v36 }
  0x35   :  { %v416_v7 = vsub.f32 %v2664_v52, %v3660_v2  ;;  %v196_v34 = vsub.f32 %v2667_v49, %v3661_v32  ;;  %v298_v53 = vand.u32 4294901760, %v297_v29  ;;  %v3556_v2 = vand.u32 4294901760, %v2698_v61 }
  0x36   :  { %v410_v13 = vand.u32 4294901760, %v409_v33  ;;  %v304_v33 = vsub.f32 %v2673_v1, %v3662_v47  ;;  %v203_v39 = vand.u32 4294901760, %v202_v21  ;;  %v2710_v51 = vsub.f32 %v2575_v56, %v2606_v41  ;;  %v3666_v47 = vld [vmem:[#allocation6_spill] sm:$0xff] }
  0x37   :  { %v417_v14 = vand.u32 4294901760, %v416_v7  ;;  %v197_v28 = vand.u32 4294901760, %v196_v34  ;;  %v423_v32 = vsub.f32 %v2688_v36, %v3557_v26  ;;  %v2717_v29 = vsub.f32 %v2598_v44, %v2625_v30  ;;  %v3679_v26 = vld [vmem:[#allocation19_spill] sm:$0xff] }
  0x38   :  { %1886 = vmatprep.subr.mxu1 %v410_v13  ;;  %v305_v46 = vand.u32 4294901760, %v304_v33  ;;  %v311_v21 = vsub.f32 %v2698_v61, %v3556_v2  ;;  %v3555_v7 = vand.u32 4294901760, %v2710_v51  ;;  %v3667_v33 = vld [vmem:[#allocation24_spill] sm:$0xff]  ;;  %v3678_v2 = vand.u32 4294901760, %v2315_v18 }
  0x39   :  { %1887 = vmatpush3.msra.mxu1 %v298_v53  ;;  %3663 = vst [vmem:[#allocation28_spill] sm:$0xff] %v2717_v29  ;;  %198 = vmatprep.mubr.f32.mxu0 %v197_v28  ;;  %v424_v56 = vand.u32 4294901760, %v423_v32  ;;  %v3554_v34 = vand.u32 4294901760, %v2717_v29  ;;  %v3664_v28 = vld [vmem:[#allocation5_spill] sm:$0xff]  ;;  %v3668_v32 = vld [vmem:[#allocation7_spill] sm:$0xff]  ;;  %v3686_v18 = vand.u32 4294901760, %v2357_v35 }
  0x3a   :  { %1888 = vmatprep.subr.mxu1 %v417_v14  ;;  %204 = vmatmul.mubr.f32.vlgmr.msra.gmra.mxu0 %v203_v39  ;;  %v312_v13 = vand.u32 4294901760, %v311_v21  ;;  %v430_v53 = vsub.f32 %v2710_v51, %v3555_v7  ;;  %v3665_v39 = vld [vmem:[#allocation22_spill] sm:$0xff]  ;;  %v3669_v21 = vld [vmem:[#allocation8_spill] sm:$0xff] }
  0x3b   :  { %1889 = vmatpush3.msra.mxu1 %v305_v46  ;;  %1898 = vmatpush3.msra.mxu0 %v2328_v23  ;;  %v318_v14 = vsub.f32 %v2717_v29, %v3554_v34  ;;  %v3676_v34 = vld [vmem:[#allocation15_spill] sm:$0xff]  ;;  %v3677_v7 = vld [vmem:[#allocation16_spill] sm:$0xff] }
  0x3c   :  { %1890 = vmatprep.subr.mxu1 %v424_v56  ;;  %1899 = vmatprep.subr.mxu0 %v2334_v25  ;;  %v431_v46 = vand.u32 4294901760, %v430_v53  ;;  %v3670_v56 = vld [vmem:[#allocation9_spill] sm:$0xff]  ;;  %v3672_v53 = vld [vmem:[#allocation11_spill] sm:$0xff] }
  0x3d   :  { %1891 = vmatpush3.msra.mxu1 %v312_v13  ;;  %1900 = vmatpush3.msra.mxu0 %v2348_v31  ;;  %v319_v44 = vand.u32 4294901760, %v318_v14  ;;  %v3671_v13 = vld [vmem:[#allocation10_spill] sm:$0xff]  ;;  %v3673_v14 = vld [vmem:[#allocation12_spill] sm:$0xff] }
  0x3e   :  { %571 = vmatprep.mubr.f32.mxu0 %v2667_v49  ;;  %1901 = vmatprep.subr.mxu0 %v2357_v35  ;;  %v3692_v35 = vand.u32 4294901760, %v2660_v20 }
  0x3f   :  { %1892 = vmatprep.subr.mxu1 %v431_v46  ;;  %1902 = vmatpush3.msra.mxu0 %v2370_v40  ;;  %v3674_v46 = vld [vmem:[#allocation13_spill] sm:$0xff] }
  0x40   :  { %1893 = vmatpush3.msra.mxu1 %v319_v44  ;;  %1903 = vmatprep.subr.mxu0 %v2384_v45  ;;  %v3675_v44 = vld [vmem:[#allocation14_spill] sm:$0xff] }
  0x41   :  { %436 = vmatmul.mubr.f32.vlgmr.msra.gmra.mxu1 %v2638_v27  ;;  %1904 = vmatpush3.msra.mxu0 %v2410_v59  ;;  %v3680_v27 = vand.u32 4294901760, %v2328_v23  ;;  %v3688_v23 = vand.u32 4294901760, %v2370_v40  ;;  %v3694_v40 = vand.u32 4294901760, %v2433_v8 }
  0x42   :  { %1932 = vmatprep.subr.mxu1 %v2295_v3  ;;  %1905 = vmatprep.subr.mxu0 %v2422_v0 }
  0x43   :  { %1933 = vmatpush3.msra.mxu1 %v2297_v4  ;;  %1906 = vmatpush3.msra.mxu0 %v2433_v8  ;;  %v3698_v8 = vand.u32 4294901760, %v2482_v6 }
  0x44   :  { %1934 = vmatprep.subr.mxu1 %v2299_v5  ;;  %1907 = vmatprep.subr.mxu0 %v2444_v42 }
  0x45   :  { %1935 = vmatpush3.msra.mxu1 %v2301_v9  ;;  %1908 = vmatpush3.msra.mxu0 %v2456_v48 }
  0x46   :  { %1936 = vmatprep.subr.mxu1 %v2303_v10  ;;  %1909 = vmatprep.subr.mxu0 %v2470_v57 }
  0x47   :  { %1937 = vmatpush3.msra.mxu1 %v2305_v11  ;;  %1910 = vmatpush3.msra.mxu0 %v2482_v6 }
  0x48   :  { %1938 = vmatprep.subr.mxu1 %v2308_v15  ;;  %1911 = vmatprep.subr.mxu0 %v2503_v54 }
  0x49   :  { %1939 = vmatpush3.msra.mxu1 %v2310_v16  ;;  %1912 = vmatpush3.msra.mxu0 %v2516_v63 }
  0x4a   :  { %1940 = vmatprep.subr.mxu1 %v2312_v17  ;;  %1913 = vmatprep.subr.mxu0 %v2534_v55 }
  0x4b   :  { %1941 = vmatpush3.msra.mxu1 %v2325_v22  ;;  %1914 = vmatpush3.msra.mxu0 %v2547_v58 }
  0x4c   :  { %1942 = vmatprep.subr.mxu1 %v2331_v24  ;;  %1915 = vmatprep.subr.mxu0 %v2559_v60 }
  0x4d   :  { %1943 = vmatpush3.msra.mxu1 %v3664_v28  ;;  %1916 = vmatpush3.msra.mxu0 %v3665_v39 }
  0x4e   :  { %1944 = vmatprep.subr.mxu1 %v3666_v47  ;;  %1917 = vmatprep.subr.mxu0 %v3667_v33 }
  0x4f   :  { %1945 = vmatpush3.msra.mxu1 %v3668_v32  ;;  %1918 = vmatpush3.msra.mxu0 %v2596_v50 }
  0x50   :  { %1946 = vmatprep.subr.mxu1 %v3669_v21  ;;  %1919 = vmatprep.subr.mxu0 %v2618_v37 }
  0x51   :  { %1947 = vmatpush3.msra.mxu1 %v3670_v56  ;;  %1920 = vmatpush3.msra.mxu0 %v2629_v12 }
  0x52   :  { %1948 = vmatprep.subr.mxu1 %v3671_v13  ;;  %1921 = vmatprep.subr.mxu0 %v2642_v38 }
  0x53   :  { %1949 = vmatpush3.msra.mxu1 %v3672_v53  ;;  %1922 = vmatpush3.msra.mxu0 %v2652_v43 }
  0x54   :  { %1950 = vmatprep.subr.mxu1 %v3673_v14  ;;  %1923 = vmatprep.subr.mxu0 %v2664_v52 }
  0x55   :  { %1951 = vmatpush3.msra.mxu1 %v3674_v46  ;;  %1924 = vmatpush3.msra.mxu0 %v2673_v1 }
  0x56   :  { %1952 = vmatprep.subr.mxu1 %v3675_v44  ;;  %1925 = vmatprep.subr.mxu0 %v2688_v36 }
  0x57   :  { %1953 = vmatpush3.msra.mxu1 %v3676_v34  ;;  %1926 = vmatpush3.msra.mxu0 %v2698_v61  ;;  %v3681_v34 = vld [vmem:[#allocation20_spill] sm:$0xff] }
  0x58   :  { %1954 = vmatprep.subr.mxu1 %v3677_v7  ;;  %1927 = vmatprep.subr.mxu0 %v2710_v51  ;;  %v3682_v7 = vand.u32 4294901760, %v2334_v25  ;;  %v3689_v25 = vand.u32 4294901760, %v2384_v45  ;;  %v3695_v45 = vand.u32 4294901760, %v2444_v42  ;;  %v73_v42 = vld [vmem:[#allocation2 + $0x170] sm:$0xff] }
  0x59   :  { %1955 = vmatpush3.msra.mxu1 %v2512_v62  ;;  %1928 = vmatpush3.msra.mxu0 %v2717_v29  ;;  %v3683_v62 = vld [vmem:[#allocation21_spill] sm:$0xff]  ;;  %v3684_v29 = vand.u32 4294901760, %v2348_v31  ;;  %v3690_v31 = vand.u32 4294901760, %v2667_v49  ;;  %v2847_v6 = vand.u32 4294901760, %v73_v42 }
  0x5a   :  { %1956 = vmatprep.subr.mxu1 %v2526_v19  ;;  %574 = vmatmul.mubr.f32.vlgmr.msra.gmra.mxu0 %v2660_v20  ;;  %v3685_v19 = vld [vmem:[#allocation23_spill] sm:$0xff]  ;;  %v71_v49 = vld [vmem:[#allocation2 + $0x160] sm:$0xff] }
  0x5b   :  { %1967 = vmatprep.subr.mxu0 %v3678_v2  ;;  %1957 = vmatpush3.msra.mxu1 %v3679_v26  ;;  %v3687_v2 = vld [vmem:[#allocation25_spill] sm:$0xff]  ;;  %3702 = vst [vmem:[#allocation5_spill] sm:$0xff] %v2847_v6 }
  0x5c   :  { %1968 = vmatpush3.msra.mxu0 %v3680_v27  ;;  %1958 = vmatprep.subr.mxu1 %v3681_v34  ;;  %v3691_v27 = vand.u32 4294901760, %v2410_v59  ;;  %v3696_v59 = vand.u32 4294901760, %v2456_v48 }
  0x5d   :  { %1969 = vmatprep.subr.mxu0 %v3682_v7  ;;  %1959 = vmatpush3.msra.mxu1 %v3683_v62 }
  0x5e   :  { %1970 = vmatpush3.msra.mxu0 %v3684_v29  ;;  %1960 = vmatprep.subr.mxu1 %v3685_v19  ;;  %v3693_v29 = vand.u32 4294901760, %v2422_v0  ;;  %v3697_v0 = vand.u32 4294901760, %v2470_v57  ;;  %v89_v57 = vld [vmem:[#allocation2 + $0x1f0] sm:$0xff] }
  0x5f   :  { %1971 = vmatprep.subr.mxu0 %v3686_v18  ;;  %1961 = vmatpush3.msra.mxu1 %v3687_v2  ;;  %v2861_v20 = vand.u32 4294901760, %v89_v57  ;;  %v86_v18 = vld [vmem:[#allocation2 + $0x1d8] sm:$0xff] }
  0x60   :  { %1972 = vmatpush3.msra.mxu0 %v3688_v23  ;;  %1962 = vmatprep.subr.mxu1 %v2606_v41  ;;  %v3712_v23 = vand.u32 4294901760, %v2629_v12 }
  0x61   :  { %1973 = vmatprep.subr.mxu0 %v3689_v25  ;;  %1963 = vmatpush3.msra.mxu1 %v2625_v30  ;;  %v2887_v25 = vand.u32 4294901760, %v71_v49 }
  0x62   :  { %678 = vmatprep.mubr.f32.mxu1 %v3690_v31  ;;  %1974 = vmatpush3.msra.mxu0 %v3691_v27  ;;  %v2891_v31 = vsub.f32 %v89_v57, %v2861_v20  ;;  %v69_v27 = vld [vmem:[#allocation2 + $0x150] sm:$0xff]  ;;  %v3725_v57 = vand.u32 4294901760, %v2710_v51  ;;  %v63_v51 = vld [vmem:[#allocation2 + $0x120] sm:$0xff] }
  0x63   :  { %682 = vmatmul.mubr.f32.vlgmr.msra.gmra.mxu1 %v3692_v35  ;;  %1975 = vmatprep.subr.mxu0 %v3693_v29  ;;  %3713 = vst [vmem:[#allocation7_spill] sm:$0xff] %v2887_v25  ;;  %v3715_v35 = vand.u32 4294901760, %v2652_v43  ;;  %v3719_v43 = vand.u32 4294901760, %v2673_v1 }
  0x64   :  { %2002 = vmatprep.subr.mxu1 %v2295_v3  ;;  %1976 = vmatpush3.msra.mxu0 %v3694_v40  ;;  %v74_v3 = vld [vmem:[#allocation2 + $0x178] sm:$0xff]  ;;  %v85_v40 = vld [vmem:[#allocation2 + $0x1d0] sm:$0xff] }
  0x65   :  { %2003 = vmatpush3.msra.mxu1 %v2297_v4  ;;  %1977 = vmatprep.subr.mxu0 %v3695_v45  ;;  %v90_v4 = vld [vmem:[#allocation2 + $0x1f8] sm:$0xff]  ;;  %v2840_v48 = vand.u32 4294901760, %v74_v3 }
  0x66   :  { %2004 = vmatprep.subr.mxu1 %v2299_v5  ;;  %1978 = vmatpush3.msra.mxu0 %v3696_v59  ;;  %v3699_v5 = vand.u32 4294901760, %v2503_v54  ;;  %v3703_v54 = vand.u32 4294901760, %v2547_v58  ;;  %v87_v58 = vld [vmem:[#allocation2 + $0x1e0] sm:$0xff] }
  0x67   :  { %2005 = vmatpush3.msra.mxu1 %v2301_v9  ;;  %1979 = vmatprep.subr.mxu0 %v3697_v0  ;;  %v3700_v9 = vand.u32 4294901760, %v2516_v63  ;;  %v72_v63 = vld [vmem:[#allocation2 + $0x168] sm:$0xff]  ;;  %v2929_v0 = vand.u32 4294901760, %v69_v27 }
  0x68   :  { %2006 = vmatprep.subr.mxu1 %v2303_v10  ;;  %1980 = vmatpush3.msra.mxu0 %v3698_v8  ;;  %v3701_v10 = vand.u32 4294901760, %v2534_v55  ;;  %v3705_v55 = vand.u32 4294901760, %v3665_v39  ;;  %v2877_v39 = vand.u32 4294901760, %v72_v63  ;;  %v68_v8 = vld [vmem:[#allocation2 + $0x148] sm:$0xff] }
  0x69   :  { %2007 = vmatpush3.msra.mxu1 %v2305_v11  ;;  %1981 = vmatprep.subr.mxu0 %v3699_v5  ;;  %v2845_v11 = vand.u32 4294901760, %v90_v4  ;;  %3720 = vst [vmem:[#allocation10_spill] sm:$0xff] %v2929_v0 }
  0x6a   :  { %2008 = vmatprep.subr.mxu1 %v2308_v15  ;;  %1982 = vmatpush3.msra.mxu0 %v3700_v9  ;;  %v88_v15 = vld [vmem:[#allocation2 + $0x1e8] sm:$0xff]  ;;  %3709 = vst [vmem:[#allocation6_spill] sm:$0xff] %v2877_v39  ;;  %v2905_v29 = vsub.f32 %v72_v63, %v2877_v39  ;;  %v3723_v9 = vand.u32 4294901760, %v2698_v61  ;;  %v2962_v63 = vand.u32 4294901760, %v68_v8 }
  0x6b   :  { %2009 = vmatpush3.msra.mxu1 %v2310_v16  ;;  %1983 = vmatprep.subr.mxu0 %v3701_v10  ;;  %v3704_v16 = vand.u32 4294901760, %v2559_v60  ;;  %v2867_v60 = vsub.f32 %v73_v42, %v2847_v6  ;;  %v2872_v7 = vsub.f32 %v90_v4, %v2845_v11  ;;  %v3721_v4 = vand.u32 4294901760, %v2688_v36  ;;  %v3724_v36 = vld [vmem:[#allocation15_spill] sm:$0xff] }
  0x6c   :  { %2010 = vmatprep.subr.mxu1 %v2312_v17  ;;  %1984 = vmatpush3.msra.mxu0 %v3703_v54  ;;  %v2859_v17 = vsub.f32 %v74_v3, %v2840_v48  ;;  %v84_v3 = vld [vmem:[#allocation2 + $0x1c8] sm:$0xff]  ;;  %v3726_v54 = vld [vmem:[#allocation16_spill] sm:$0xff]  ;;  %3728 = vst [vmem:[#allocation13_spill] sm:$0xff] %v2962_v63 }
  0x6d   :  { %2011 = vmatpush3.msra.mxu1 %v2325_v22  ;;  %1985 = vmatprep.subr.mxu0 %v3704_v16  ;;  %v3706_v22 = vand.u32 4294901760, %v3667_v33  ;;  %v3710_v33 = vand.u32 4294901760, %v2618_v37  ;;  %v3714_v37 = vand.u32 4294901760, %v2642_v38  ;;  %v3565_v12 = vand.u32 4294901760, %v2867_v60 }
  0x6e   :  { %2012 = vmatprep.subr.mxu1 %v2331_v24  ;;  %1986 = vmatpush3.msra.mxu0 %v3705_v55  ;;  %v2869_v24 = vand.u32 4294901760, %v88_v15  ;;  %v2907_v38 = vand.u32 4294901760, %v86_v18  ;;  %v2960_v16 = vand.u32 4294901760, %v84_v3  ;;  %v67_v55 = vld [vmem:[#allocation2 + $0x140] sm:$0xff] }
  0x6f   :  { %2013 = vmatpush3.msra.mxu1 %v3664_v28  ;;  %1987 = vmatprep.subr.mxu0 %v3706_v22  ;;  %v3708_v28 = vand.u32 4294901760, %v2596_v50  ;;  %v70_v50 = vld [vmem:[#allocation2 + $0x158] sm:$0xff]  ;;  %v2944_v42 = vsub.f32 %v2867_v60, %v3565_v12 }
  0x70   :  { %2014 = vmatprep.subr.mxu1 %v3666_v47  ;;  %3707 = vst [vmem:[#allocation22_spill] sm:$0xff] %v2869_v24  ;;  %v2882_v47 = vand.u32 4294901760, %v87_v58  ;;  %3716 = vst [vmem:[#allocation8_spill] sm:$0xff] %v2907_v38  ;;  %v2912_v45 = vand.u32 4294901760, %v70_v50  ;;  %v2952_v10 = vsub.f32 %v86_v18, %v2907_v38  ;;  %v3729_v22 = vld [vmem:[#allocation28_spill] sm:$0xff]  ;;  %v2975_v18 = vsub.f32 %v69_v27, %v2929_v0 }
  0x71   :  { %1988 = vmatpush3.msra.mxu0 %v3708_v28  ;;  %2015 = vmatpush3.msra.mxu1 %v3668_v32  ;;  %v3568_v32 = vand.u32 4294901760, %v2859_v17  ;;  %3727 = vst [vmem:[#allocation12_spill] sm:$0xff] %v2960_v16  ;;  %v3731_v28 = vld [vmem:[#allocation27_spill] sm:$0xff] }
  0x72   :  { %1989 = vmatprep.subr.mxu0 %v3710_v33  ;;  %2016 = vmatprep.subr.mxu1 %v3669_v21  ;;  %3711 = vst [vmem:[#allocation24_spill] sm:$0xff] %v2882_v47  ;;  %v3570_v21 = vand.u32 4294901760, %v2872_v7  ;;  %3718 = vst [vmem:[#allocation9_spill] sm:$0xff] %v2912_v45  ;;  %v2915_v59 = vsub.f32 %v87_v58, %v2882_v47  ;;  %v66_v58 = vld [vmem:[#allocation2 + $0x138] sm:$0xff] }
  0x73   :  { %1990 = vmatpush3.msra.mxu0 %v3712_v23  ;;  %2017 = vmatpush3.msra.mxu1 %v3670_v56  ;;  %v2899_v56 = vsub.f32 %v88_v15, %v2869_v24  ;;  %v2958_v15 = vsub.f32 %v70_v50, %v2912_v45  ;;  %v83_v23 = vld [vmem:[#allocation2 + $0x1c0] sm:$0xff] }
  0x74   :  { %1991 = vmatprep.subr.mxu0 %v3714_v37  ;;  %2018 = vmatprep.subr.mxu1 %v3671_v13  ;;  %v3717_v13 = vand.u32 4294901760, %v2664_v52  ;;  %v2926_v52 = vsub.f32 %v2859_v17, %v3568_v32  ;;  %v2937_v1 = vsub.f32 %v2872_v7, %v3570_v21  ;;  %v3567_v61 = vand.u32 4294901760, %v2915_v59  ;;  %v3732_v37 = vld [vmem:[#allocation17_spill] sm:$0xff]  ;;  %v64_v21 = vld [vmem:[#allocation2 + $0x128] sm:$0xff] }
  0x75   :  { %1992 = vmatpush3.msra.mxu0 %v3715_v35  ;;  %2019 = vmatpush3.msra.mxu1 %v3672_v53  ;;  %v2921_v53 = vsub.f32 %v71_v49, %v2887_v25  ;;  %v3564_v5 = vand.u32 4294901760, %v2899_v56  ;;  %v3730_v49 = vand.u32 4294901760, %v3729_v22  ;;  %v3733_v35 = vld [vmem:[#allocation26_spill] sm:$0xff]  ;;  %v3571_v22 = vand.u32 4294901760, %v2952_v10 }
  0x76   :  { %1993 = vmatprep.subr.mxu0 %v3717_v13  ;;  %2020 = vmatprep.subr.mxu1 %v3673_v14  ;;  %v3566_v14 = vand.u32 4294901760, %v2891_v31  ;;  %v80_v13 = vld [vmem:[#allocation2 + $0x1a8] sm:$0xff] }
  0x77   :  { %1994 = vmatpush3.msra.mxu0 %v3719_v43  ;;  %2021 = vmatpush3.msra.mxu1 %v3674_v46  ;;  %v2939_v46 = vand.u32 4294901760, %v85_v40  ;;  %v3569_v50 = vand.u32 4294901760, %v2921_v53 }
  0x78   :  { %1995 = vmatprep.subr.mxu0 %v3721_v4  ;;  %2022 = vmatprep.subr.mxu1 %v3675_v44  ;;  %v3563_v44 = vand.u32 4294901760, %v2905_v29  ;;  %v2972_v33 = vsub.f32 %v2891_v31, %v3566_v14  ;;  %v2985_v4 = vsub.f32 %v2899_v56, %v3564_v5  ;;  %v3572_v5 = vand.u32 4294901760, %v2958_v15  ;;  %v81_v14 = vld [vmem:[#allocation2 + $0x1b0] sm:$0xff] }
  0x79   :  { %3722 = vst [vmem:[#allocation11_spill] sm:$0xff] %v2939_v46  ;;  %1996 = vmatpush3.msra.mxu0 %v3723_v9  ;;  %2023 = vmatpush3.msra.mxu1 %v3724_v36  ;;  %v2987_v9 = vld [vmem:[#allocation2 + $0x1b8] sm:$0xff]  ;;  %v2990_v27 = vsub.f32 %v85_v40, %v2939_v46  ;;  %v3734_v36 = vld [vmem:[#allocation18_spill] sm:$0xff]  ;;  %v3007_v40 = vsub.f32 %v68_v8, %v2962_v63 }
  0x7a   :  { %1997 = vmatprep.subr.mxu0 %v3725_v57  ;;  %2024 = vmatprep.subr.mxu1 %v3726_v54  ;;  %v2997_v57 = vsub.f32 %v2905_v29, %v3563_v44  ;;  %v2999_v54 = vand.u32 4294901760, %v67_v55  ;;  %v3014_v44 = vsub.f32 %v2915_v59, %v3567_v61  ;;  %v3023_v8 = vsub.f32 %v2921_v53, %v3569_v50 }
  0x7b   :  { %1998 = vmatpush3.msra.mxu0 %v3730_v49  ;;  %848 = vmatprep.mubr.f32.mxu0 %v3731_v28  ;;  %v3002_v49 = vand.u32 4294901760, %v66_v58  ;;  %3737 = vst [vmem:[#allocation20_spill] sm:$0xff] %v3007_v40  ;;  %v3026_v12 = vand.u32 4294901760, %v2987_v9  ;;  %v3029_v61 = vsub.f32 %v84_v3, %v2960_v16  ;;  %v3060_v3 = vand.u32 4294901760, %v81_v14 }
  0x7c   :  { %2025 = vmatpush3.msra.mxu1 %v3732_v37  ;;  %850 = vmatmul.mubr.f32.vlgmr.msra.gmra.mxu0 %v3733_v35  ;;  %3735 = vst [vmem:[#allocation14_spill] sm:$0xff] %v2999_v54  ;;  %v65_v37 = vld [vmem:[#allocation2 + $0x130] sm:$0xff]  ;;  %v3042_v43 = vsub.f32 %v67_v55, %v2999_v54  ;;  %v3058_v55 = vsub.f32 %v2958_v15, %v3572_v5 }
  0x7d   :  { %2026 = vmatprep.subr.mxu1 %v3734_v36  ;;  %2037 = vmatprep.subr.mxu0 %v2845_v11  ;;  %3736 = vst [vmem:[#allocation19_spill] sm:$0xff] %v3002_v49  ;;  %v3009_v36 = vand.u32 4294901760, %v83_v23  ;;  %3739 = vst [vmem:[#allocation23_spill] sm:$0xff] %v3026_v12  ;;  %v3035_v32 = vand.u32 4294901760, %v65_v37 }
  0x7e   :  { %2027 = vmatpush3.msra.mxu1 %v3679_v26  ;;  %2038 = vmatpush3.msra.mxu0 %v2840_v48  ;;  %v1195_v26 = vand.u32 4294901760, %v2972_v33  ;;  %3741 = vst [vmem:[#allocation15_spill] sm:$0xff] %v3042_v43  ;;  %3742 = vst [vmem:[#allocation16_spill] sm:$0xff] %v3060_v3  ;;  %v79_v33 = vld [vmem:[#allocation2 + $0x1a0] sm:$0xff]  ;;  %v1104_v50 = vand.u32 4294901760, %v3058_v55 }
  0x7f   :  { %3738 = vst [vmem:[#allocation21_spill] sm:$0xff] %v3009_v36  ;;  %2028 = vmatprep.subr.mxu1 %v3681_v34  ;;  %2039 = vmatprep.subr.mxu0 %v2861_v20  ;;  %3740 = vst [vmem:[#allocation25_spill] sm:$0xff] %v3035_v32  ;;  %v3050_v34 = vsub.f32 %v66_v58, %v3002_v49  ;;  %v3068_v58 = vld [vmem:[%s3491_s0 + $0x8] sm:$0xff] }
  0x80   :  { %2029 = vmatpush3.msra.mxu1 %v3683_v62  ;;  %2040 = vmatpush3.msra.mxu0 %v2847_v6  ;;  %v3047_v62 = vsub.f32 %v2952_v10, %v3571_v22  ;;  %v3063_v22 = vsub.f32 %v83_v23, %v3009_v36  ;;  %v3745_v23 = vand.u32 4294901760, %v2990_v27  ;;  %v3755_v6 = vand.u32 4294901760, %v3042_v43 }
  0x81   :  { %2030 = vmatprep.subr.mxu1 %v3685_v19  ;;  %2041 = vmatprep.subr.mxu0 %v2869_v24  ;;  %v3074_v19 = vand.u32 4294901760, %v64_v21  ;;  %v3106_v24 = vand.u32 4294901760, %v79_v33 }
  0x82   :  { %2031 = vmatpush3.msra.mxu1 %v3687_v2  ;;  %2042 = vmatpush3.msra.mxu0 %v2877_v39  ;;  %3743 = vst [vmem:[#allocation28_spill] sm:$0xff] %v3063_v22  ;;  %v3082_v39 = vsub.f32 %v2990_v27, %v3745_v23  ;;  %v3746_v2 = vand.u32 4294901760, %v2975_v18  ;;  %v3750_v23 = vand.u32 4294901760, %v2926_v52 }
  0x83   :  { %2032 = vmatprep.subr.mxu1 %v2606_v41  ;;  %2043 = vmatprep.subr.mxu0 %v2882_v47  ;;  %3744 = vst [vmem:[#allocation27_spill] sm:$0xff] %v3074_v19  ;;  %v3085_v41 = vsub.f32 %v65_v37, %v3035_v32  ;;  %v3092_v47 = vand.u32 4294901760, %v63_v51  ;;  %v94_v37 = vcombine.high %v3068_v58, %v3068_v58 }
  0x84   :  { %2033 = vmatpush3.msra.mxu1 %v2625_v30  ;;  %952 = vmatprep.mubr.f32.mxu1 %v3731_v28  ;;  %v3090_v5 = vsub.f32 %v2975_v18, %v3746_v2  ;;  %v1216_v30 = vand.u32 4294901760, %v3047_v62  ;;  %v3097_v28 = vand.u32 4294901760, %v80_v13  ;;  %v3749_v2 = vand.u32 4294901760, %v2937_v1 }
  0x85   :  { %3747 = vst [vmem:[#allocation17_spill] sm:$0xff] %v3092_v47  ;;  %2044 = vmatpush3.msra.mxu0 %v2887_v25  ;;  %954 = vmatmul.mubr.f32.vlgmr.msra.gmra.mxu1 %v3733_v35  ;;  %v3111_v62 = vsub.f32 %v2987_v9, %v3026_v12  ;;  %v62_v25 = vld [vmem:[#allocation2 + $0x118] sm:$0xff]  ;;  %v3122_v55 = vsub.f32 %v64_v21, %v3074_v19  ;;  %v1223_v52 = vand.u32 4294901760, %v3082_v39  ;;  %v77_v39 = vld [vmem:[#allocation2 + $0x190] sm:$0xff] }
  0x86   :  { %3748 = vst [vmem:[#allocation26_spill] sm:$0xff] %v3097_v28  ;;  %2045 = vmatprep.subr.mxu0 %v2907_v38  ;;  %2072 = vmatprep.subr.mxu1 %v3749_v2  ;;  %v3751_v38 = vand.u32 4294901760, %v3029_v61  ;;  %v3752_v2 = vand.u32 4294901760, %v3007_v40  ;;  %v78_v9 = vld [vmem:[#allocation2 + $0x198] sm:$0xff]  ;;  %v3137_v21 = vsub.f32 %v81_v14, %v3060_v3  ;;  %v3757_v14 = vand.u32 4294901760, %v2985_v4 }
  0x87   :  { %2046 = vmatpush3.msra.mxu0 %v2912_v45  ;;  %2073 = vmatpush3.msra.mxu1 %v3750_v23  ;;  %v1111_v23 = vand.u32 4294901760, %v3090_v5  ;;  %v61_v5 = vld [vmem:[#allocation2 + $0x110] sm:$0xff]  ;;  %v3152_v45 = vand.u32 4294901760, %v94_v37 }
  0x88   :  { %v3119_v1 = vsub.f32 %v3029_v61, %v3751_v38  ;;  %v3127_v35 = vsub.f32 %v3007_v40, %v3752_v2  ;;  %2047 = vmatprep.subr.mxu0 %v2939_v46  ;;  %2074 = vmatprep.subr.mxu1 %v1195_v26  ;;  %v3134_v38 = vsub.f32 %v63_v51, %v3092_v47  ;;  %v3754_v2 = vand.u32 4294901760, %v2944_v42 }
  0x89   :  { %2048 = vmatpush3.msra.mxu0 %v2929_v0  ;;  %v3145_v46 = vsub.f32 %v3042_v43, %v3755_v6  ;;  %v3147_v26 = vand.u32 4294901760, %v62_v25  ;;  %v3150_v51 = vsub.f32 %v80_v13, %v3097_v28  ;;  %3756 = vst [vmem:[#allocation29_spill] sm:$0xff] %v3152_v45  ;;  %v3758_v42 = vand.u32 4294901760, %v3063_v22  ;;  %v76_v0 = vld [vmem:[#allocation2 + $0x188] sm:$0xff]  ;;  %1296 = vmatprep.mubr.f32.mxu1 %v3152_v45 }
  0x8a   :  { %3753 = vst [vmem:[#allocation18_spill] sm:$0xff] %v3134_v38  ;;  %2075 = vmatpush3.msra.mxu1 %v3754_v2  ;;  %2049 = vmatprep.subr.mxu0 %v2960_v16  ;;  %v3162_v6 = vand.u32 4294901760, %v78_v9  ;;  %v3166_v43 = vand.u32 4294901760, %v3068_v58  ;;  %v3760_v13 = vand.u32 4294901760, %v2997_v57  ;;  %v1230_v4 = vand.u32 4294901760, %v3119_v1 }
  0x8b   :  { %2076 = vmatprep.subr.mxu1 %v3757_v14  ;;  %v3160_v2 = vsub.f32 %v3063_v22, %v3758_v42  ;;  %2050 = vmatpush3.msra.mxu0 %v2962_v63  ;;  %v1118_v14 = vand.u32 4294901760, %v3127_v35  ;;  %v3761_v16 = vand.u32 4294901760, %v3050_v34  ;;  %v3762_v40 = vand.u32 4294901760, %v3014_v44 }
  0x8c   :  { %3759 = vst [vmem:[#allocation30_spill] sm:$0xff] %v3166_v43  ;;  %2077 = vmatpush3.msra.mxu1 %v3760_v13  ;;  %2051 = vmatprep.subr.mxu0 %v3009_v36  ;;  %v3182_v63 = vand.u32 4294901760, %v77_v39  ;;  %v3185_v1 = vand.u32 4294901760, %v61_v5  ;;  %v3188_v35 = vsub.f32 %v79_v33, %v3106_v24  ;;  %v1125_v13 = vand.u32 4294901760, %v3145_v46  ;;  %v75_v46 = vld [vmem:[#allocation2 + $0x180] sm:$0xff] }
  0x8d   :  { %v3176_v42 = vsub.f32 %v3050_v34, %v3761_v16  ;;  %2078 = vmatprep.subr.mxu1 %v3762_v40  ;;  %2052 = vmatpush3.msra.mxu0 %v2999_v54  ;;  %v3764_v16 = vand.u32 4294901760, %v3023_v8  ;;  %v3195_v22 = vsub.f32 %v62_v25, %v3147_v26  ;;  %v60_v40 = vld [vmem:[#allocation2 + $0x108] sm:$0xff]  ;;  %v3199_v57 = vsub.f32 %v94_v37, %v3152_v45  ;;  %v3799_v45 = vld [vmem:[#allocation25_spill] sm:$0xff] }
  0x8e   :  { %3763 = vst [vmem:[#allocation31_spill] sm:$0xff] %v3182_v63  ;;  %2053 = vmatprep.subr.mxu0 %v3026_v12  ;;  %v1237_v33 = vand.u32 4294901760, %v3160_v2  ;;  %v3765_v54 = vand.u32 4294901760, %v3111_v62  ;;  %v3210_v25 = vsub.f32 %v3068_v58, %v3166_v43  ;;  %v59_v12 = vld [vmem:[#allocation2 + $0x100] sm:$0xff]  ;;  %v3767_v58 = vand.u32 4294901760, %v3137_v21 }
  0x8f   :  { %2079 = vmatpush3.msra.mxu1 %v3764_v16  ;;  %v3206_v16 = vand.u32 4294901760, %v76_v0  ;;  %2054 = vmatpush3.msra.mxu0 %v3002_v49  ;;  %v1132_v37 = vand.u32 4294901760, %v3176_v42  ;;  %v3228_v42 = vand.u32 4294901760, %v60_v40  ;;  %v3242_v36 = vand.u32 4294901760, %v59_v12 }
  0x90   :  { %2080 = vmatprep.subr.mxu1 %v1216_v30  ;;  %v1243_v8 = vsub.f32 %v3111_v62, %v3765_v54  ;;  %v3766_v30 = vand.u32 4294901760, %v3085_v41  ;;  %v3219_v54 = vsub.f32 %v78_v9, %v3162_v6  ;;  %2055 = vmatprep.subr.mxu0 %v3060_v3  ;;  %v1250_v49 = vsub.f32 %v3137_v21, %v3767_v58 }
  0x91   :  { %2081 = vmatpush3.msra.mxu1 %v1104_v50  ;;  %v3226_v50 = vsub.f32 %v61_v5, %v3185_v1  ;;  %2056 = vmatpush3.msra.mxu0 %v3035_v32  ;;  %v3768_v9 = vand.u32 4294901760, %v3150_v51  ;;  %v3235_v3 = vand.u32 4294901760, %v75_v46  ;;  %v3239_v58 = vsub.f32 %v77_v39, %v3182_v63 }
  0x92   :  { %v1138_v2 = vsub.f32 %v3085_v41, %v3766_v30  ;;  %2082 = vmatprep.subr.mxu1 %v1223_v52  ;;  %2057 = vmatprep.subr.mxu0 %v3097_v28  ;;  %v1244_v5 = vand.u32 4294901760, %v1243_v8  ;;  %v3615_v30 = vand.u32 4294901760, %v3134_v38  ;;  %v3769_v32 = vand.u32 4294901760, %v3122_v55 }
  0x93   :  { %2083 = vmatpush3.msra.mxu1 %v1111_v23  ;;  %v1257_v44 = vsub.f32 %v3150_v51, %v3768_v9  ;;  %2058 = vmatpush3.msra.mxu0 %v3074_v19  ;;  %v3252_v28 = vsub.f32 %v76_v0, %v3206_v16  ;;  %v3256_v8 = vsub.f32 %v60_v40, %v3228_v42  ;;  %v3770_v23 = vand.u32 4294901760, %v3188_v35 }
  0x94   :  { %2084 = vmatprep.subr.mxu1 %v1230_v4  ;;  %v1139_v9 = vand.u32 4294901760, %v1138_v2  ;;  %v1145_v52 = vsub.f32 %v3122_v55, %v3769_v32  ;;  %2059 = vmatprep.subr.mxu0 %v3106_v24  ;;  %v1251_v4 = vand.u32 4294901760, %v1250_v49  ;;  %v3618_v2 = vand.u32 4294901760, %v3195_v22 }
  0x95   :  { %2085 = vmatpush3.msra.mxu1 %v1118_v14  ;;  %v1264_v14 = vsub.f32 %v3188_v35, %v3770_v23  ;;  %2060 = vmatpush3.msra.mxu0 %v3092_v47  ;;  %v1258_v32 = vand.u32 4294901760, %v1257_v44  ;;  %v3771_v0 = vand.u32 4294901760, %v3199_v57  ;;  %v3268_v49 = vsub.f32 %v75_v46, %v3235_v3 }
  0x96   :  { %2086 = vmatprep.subr.mxu1 %v1237_v33  ;;  %2061 = vmatprep.subr.mxu0 %v3162_v6  ;;  %v3272_v40 = vsub.f32 %v59_v12, %v3242_v36  ;;  %v3774_v44 = vand.u32 4294901760, %v3210_v25  ;;  %v1146_v46 = vand.u32 4294901760, %v1145_v52  ;;  %v3775_v33 = vand.u32 4294901760, %v3219_v54 }
  0x97   :  { %2087 = vmatpush3.msra.mxu1 %v1125_v13  ;;  %v1058_v39 = vsub.f32 %v3199_v57, %v3771_v0  ;;  %3772 = vst [vmem:[#allocation32_spill] sm:$0xff] %v3268_v49  ;;  %v1152_v13 = vsub.f32 %v3134_v38, %v3615_v30  ;;  %2062 = vmatpush3.msra.mxu0 %v3147_v26  ;;  %v1265_v30 = vand.u32 4294901760, %v1264_v14  ;;  %v3776_v52 = vand.u32 4294901760, %v3239_v58 }
  0x98   :  { %2088 = vmatprep.subr.mxu1 %v1244_v5  ;;  %3773 = vst [vmem:[#allocation33_spill] sm:$0xff] %v3272_v40  ;;  %v1064_v23 = vsub.f32 %v3210_v25, %v3774_v44  ;;  %v1271_v5 = vsub.f32 %v3219_v54, %v3775_v33  ;;  %2063 = vmatprep.subr.mxu0 %v3182_v63  ;;  %v3620_v12 = vand.u32 4294901760, %v3268_v49  ;;  %v3777_v63 = vand.u32 4294901760, %v3226_v50 }
  0x99   :  { %2089 = vmatpush3.msra.mxu1 %v1132_v37  ;;  %v1159_v44 = vsub.f32 %v3195_v22, %v3618_v2  ;;  %2064 = vmatpush3.msra.mxu0 %v3185_v1  ;;  %v1059_v37 = vand.u32 4294901760, %v1058_v39  ;;  %v1278_v33 = vsub.f32 %v3239_v58, %v3776_v52  ;;  %v3619_v0 = vand.u32 4294901760, %v3272_v40 }
  0x9a   :  { %2090 = vmatprep.subr.mxu1 %v1251_v4  ;;  %2065 = vmatprep.subr.mxu0 %v3206_v16  ;;  %v1153_v4 = vand.u32 4294901760, %v1152_v13  ;;  %v1065_v14 = vand.u32 4294901760, %v1064_v23  ;;  %v1166_v2 = vsub.f32 %v3226_v50, %v3777_v63  ;;  %v3778_v39 = vand.u32 4294901760, %v3252_v28 }
  0x9b   :  { %2091 = vmatpush3.msra.mxu1 %v1139_v9  ;;  %2066 = vmatpush3.msra.mxu0 %v3228_v42  ;;  %v1272_v9 = vand.u32 4294901760, %v1271_v5  ;;  %v3779_v13 = vand.u32 4294901760, %v3256_v8  ;;  %v1279_v63 = vand.u32 4294901760, %v1278_v33 }
  0x9c   :  { %2092 = vmatprep.subr.mxu1 %v1258_v32  ;;  %v1285_v52 = vsub.f32 %v3252_v28, %v3778_v39  ;;  %2067 = vmatprep.subr.mxu0 %v3235_v3  ;;  %v1160_v32 = vand.u32 4294901760, %v1159_v44  ;;  %v1167_v5 = vand.u32 4294901760, %v1166_v2  ;;  %v3783_v39 = vld [vmem:[#allocation6_spill] sm:$0xff] }
  0x9d   :  { %2093 = vmatpush3.msra.mxu1 %v1146_v46  ;;  %v1173_v23 = vsub.f32 %v3256_v8, %v3779_v13  ;;  %2068 = vmatpush3.msra.mxu0 %v3242_v36  ;;  %v1292_v46 = vsub.f32 %v3268_v49, %v3620_v12  ;;  %v3786_v13 = vld [vmem:[#allocation15_spill] sm:$0xff] }
  0x9e   :  { %2094 = vmatprep.subr.mxu1 %v1265_v30  ;;  %1060 = vmatprep.mubr.f32.mxu0 %v1059_v37  ;;  %v1180_v30 = vsub.f32 %v3272_v40, %v3619_v0  ;;  %v1286_v44 = vand.u32 4294901760, %v1285_v52  ;;  %v3784_v52 = vld [vmem:[#allocation28_spill] sm:$0xff]  ;;  %v3796_v0 = vld [vmem:[#allocation23_spill] sm:$0xff] }
  0x9f   :  { %2095 = vmatpush3.msra.mxu1 %v1153_v4  ;;  %1066 = vmatmul.mubr.f32.vlgmr.msra.gmra.mxu0 %v1065_v14  ;;  %v1174_v37 = vand.u32 4294901760, %v1173_v23  ;;  %v1293_v33 = vand.u32 4294901760, %v1292_v46  ;;  %v3780_v4 = vld [vmem:[#allocation5_spill] sm:$0xff]  ;;  %v3781_v14 = vld [vmem:[#allocation22_spill] sm:$0xff]  ;;  %v3787_v23 = vld [vmem:[#allocation7_spill] sm:$0xff] }
  0xa0   :  { %2096 = vmatprep.subr.mxu1 %v1272_v9  ;;  %2107 = vmatprep.subr.mxu0 %v2872_v7  ;;  %v1181_v2 = vand.u32 4294901760, %v1180_v30  ;;  %v3782_v9 = vld [vmem:[#allocation20_spill] sm:$0xff]  ;;  %v3789_v46 = vld [vmem:[#allocation9_spill] sm:$0xff]  ;;  %v3791_v30 = vld [vmem:[#allocation10_spill] sm:$0xff] }
  0xa1   :  { %2097 = vmatpush3.msra.mxu1 %v1160_v32  ;;  %2108 = vmatpush3.msra.mxu0 %v2859_v17  ;;  %v3785_v32 = vld [vmem:[#allocation24_spill] sm:$0xff]  ;;  %v3797_v12 = vld [vmem:[#allocation19_spill] sm:$0xff] }
  0xa2   :  { %2098 = vmatprep.subr.mxu1 %v1279_v63  ;;  %2109 = vmatprep.subr.mxu0 %v2891_v31  ;;  %v3788_v63 = vld [vmem:[#allocation8_spill] sm:$0xff] }
  0xa3   :  { %2099 = vmatpush3.msra.mxu1 %v1167_v5  ;;  %2110 = vmatpush3.msra.mxu0 %v2867_v60  ;;  %v3790_v5 = vld [vmem:[#allocation11_spill] sm:$0xff] }
  0xa4   :  { %2100 = vmatprep.subr.mxu1 %v1286_v44  ;;  %2111 = vmatprep.subr.mxu0 %v2899_v56  ;;  %v3792_v44 = vld [vmem:[#allocation12_spill] sm:$0xff] }
  0xa5   :  { %2101 = vmatpush3.msra.mxu1 %v1174_v37  ;;  %2112 = vmatpush3.msra.mxu0 %v2905_v29  ;;  %v3793_v37 = vld [vmem:[#allocation13_spill] sm:$0xff] }
  0xa6   :  { %2102 = vmatprep.subr.mxu1 %v1293_v33  ;;  %2113 = vmatprep.subr.mxu0 %v2915_v59  ;;  %v3794_v33 = vld [vmem:[#allocation21_spill] sm:$0xff] }
  0xa7   :  { %2103 = vmatpush3.msra.mxu1 %v1181_v2  ;;  %2114 = vmatpush3.msra.mxu0 %v2921_v53  ;;  %v3795_v2 = vld [vmem:[#allocation14_spill] sm:$0xff] }
  0xa8   :  { %1298 = vmatmul.mubr.f32.vlgmr.msra.gmra.mxu1 %v3166_v43  ;;  %2115 = vmatprep.subr.mxu0 %v2952_v10  ;;  %v3798_v43 = vld [vmem:[#allocation16_spill] sm:$0xff] }
  0xa9   :  { %2142 = vmatprep.subr.mxu1 %v2845_v11  ;;  %2116 = vmatpush3.msra.mxu0 %v2958_v15 }
  0xaa   :  { %2143 = vmatpush3.msra.mxu1 %v2840_v48  ;;  %2117 = vmatprep.subr.mxu0 %v2990_v27 }
  0xab   :  { %2144 = vmatprep.subr.mxu1 %v2861_v20  ;;  %2118 = vmatpush3.msra.mxu0 %v2975_v18 }
  0xac   :  { %2145 = vmatpush3.msra.mxu1 %v3780_v4  ;;  %2119 = vmatprep.subr.mxu0 %v3029_v61 }
  0xad   :  { %2146 = vmatprep.subr.mxu1 %v3781_v14  ;;  %2120 = vmatpush3.msra.mxu0 %v3782_v9 }
  0xae   :  { %2147 = vmatpush3.msra.mxu1 %v3783_v39  ;;  %2121 = vmatprep.subr.mxu0 %v3784_v52 }
  0xaf   :  { %2148 = vmatprep.subr.mxu1 %v3785_v32  ;;  %2122 = vmatpush3.msra.mxu0 %v3786_v13 }
  0xb0   :  { %2149 = vmatpush3.msra.mxu1 %v3787_v23  ;;  %2123 = vmatprep.subr.mxu0 %v3111_v62 }
  0xb1   :  { %2150 = vmatprep.subr.mxu1 %v3788_v63  ;;  %2124 = vmatpush3.msra.mxu0 %v3050_v34 }
  0xb2   :  { %2151 = vmatpush3.msra.mxu1 %v3789_v46  ;;  %2125 = vmatprep.subr.mxu0 %v3137_v21 }
  0xb3   :  { %2152 = vmatprep.subr.mxu1 %v3790_v5  ;;  %2126 = vmatpush3.msra.mxu0 %v3085_v41 }
  0xb4   :  { %2153 = vmatpush3.msra.mxu1 %v3791_v30  ;;  %2127 = vmatprep.subr.mxu0 %v3150_v51 }
  0xb5   :  { %2154 = vmatprep.subr.mxu1 %v3792_v44  ;;  %2128 = vmatpush3.msra.mxu0 %v3122_v55 }
  0xb6   :  { %2155 = vmatpush3.msra.mxu1 %v3793_v37  ;;  %2129 = vmatprep.subr.mxu0 %v3188_v35 }
  0xb7   :  { %2156 = vmatprep.subr.mxu1 %v3794_v33  ;;  %2130 = vmatpush3.msra.mxu0 %v3134_v38  ;;  %v3800_v38 = vld [vmem:[#allocation26_spill] sm:$0xff] }
  0xb8   :  { %2157 = vmatpush3.msra.mxu1 %v3795_v2  ;;  %2131 = vmatprep.subr.mxu0 %v3219_v54 }
  0xb9   :  { %2158 = vmatprep.subr.mxu1 %v3796_v0  ;;  %2132 = vmatpush3.msra.mxu0 %v3195_v22 }
  0xba   :  { %2159 = vmatpush3.msra.mxu1 %v3797_v12  ;;  %2133 = vmatprep.subr.mxu0 %v3239_v58 }
  0xbb   :  { %2160 = vmatprep.subr.mxu1 %v3798_v43  ;;  %2134 = vmatpush3.msra.mxu0 %v3226_v50 }
  0xbc   :  { %2161 = vmatpush3.msra.mxu1 %v3799_v45  ;;  %2135 = vmatprep.subr.mxu0 %v3252_v28 }
  0xbd   :  { %2162 = vmatprep.subr.mxu1 %v3800_v38  ;;  %2136 = vmatpush3.msra.mxu0 %v3256_v8  ;;  %v3801_v38 = vand.u32 4294901760, %v2872_v7  ;;  %v3806_v7 = vand.u32 4294901760, %v2899_v56  ;;  %v3811_v56 = vand.u32 4294901760, %v3210_v25 }
  0xbe   :  { %2163 = vmatpush3.msra.mxu1 %v3074_v19  ;;  %2137 = vmatprep.subr.mxu0 %v3268_v49  ;;  %v3802_v19 = vand.u32 4294901760, %v2859_v17  ;;  %v3803_v49 = vld [vmem:[#allocation31_spill] sm:$0xff]  ;;  %v3807_v17 = vand.u32 4294901760, %v2905_v29  ;;  %v3813_v29 = vand.u32 4294901760, %v2958_v15  ;;  %v3820_v15 = vand.u32 4294901760, %v3111_v62 }
  0xbf   :  { %2164 = vmatprep.subr.mxu1 %v3106_v24  ;;  %2138 = vmatpush3.msra.mxu0 %v3272_v40  ;;  %v3804_v40 = vand.u32 4294901760, %v2891_v31  ;;  %v3808_v31 = vand.u32 4294901760, %v2915_v59  ;;  %v3814_v59 = vand.u32 4294901760, %v2990_v27  ;;  %v3823_v27 = vand.u32 4294901760, %v3085_v41 }
  0xc0   :  { %1433 = vmatprep.mubr.f32.mxu0 %v3199_v57  ;;  %2165 = vmatpush3.msra.mxu1 %v3092_v47  ;;  %v3805_v47 = vand.u32 4294901760, %v2867_v60  ;;  %v3809_v60 = vand.u32 4294901760, %v3199_v57  ;;  %v3824_v62 = vand.u32 4294901760, %v3150_v51  ;;  %v3829_v51 = vand.u32 4294901760, %v3219_v54  ;;  %v3834_v54 = vld [vmem:[#allocation26_spill] sm:$0xff] }
  0xc1   :  { %1436 = vmatmul.mubr.f32.vlgmr.msra.gmra.mxu0 %v3210_v25  ;;  %2166 = vmatprep.subr.mxu1 %v3162_v6  ;;  %v3831_v57 = vand.u32 4294901760, %v3239_v58  ;;  %v3833_v25 = vand.u32 4294901760, %v3252_v28  ;;  %v3843_v28 = vld [vmem:[#allocation30_spill] sm:$0xff] }
  0xc2   :  { %2177 = vmatprep.subr.mxu0 %v3801_v38  ;;  %2167 = vmatpush3.msra.mxu1 %v3147_v26  ;;  %v3826_v38 = vand.u32 4294901760, %v3188_v35  ;;  %v3832_v35 = vand.u32 4294901760, %v3226_v50 }
  0xc3   :  { %2178 = vmatpush3.msra.mxu0 %v3802_v19  ;;  %2168 = vmatprep.subr.mxu1 %v3803_v49  ;;  %v3812_v19 = vand.u32 4294901760, %v2952_v10  ;;  %v3816_v10 = vand.u32 4294901760, %v3029_v61  ;;  %v3821_v61 = vand.u32 4294901760, %v3050_v34  ;;  %v3825_v34 = vand.u32 4294901760, %v3122_v55 }
  0xc4   :  { %2179 = vmatprep.subr.mxu0 %v3804_v40  ;;  %2169 = vmatpush3.msra.mxu1 %v3185_v1  ;;  %v3830_v55 = vand.u32 4294901760, %v3195_v22  ;;  %v3835_v22 = vand.u32 4294901760, %v3256_v8  ;;  %v3836_v40 = vld [vmem:[#allocation27_spill] sm:$0xff] }
  0xc5   :  { %2180 = vmatpush3.msra.mxu0 %v3805_v47  ;;  %2170 = vmatprep.subr.mxu1 %v3206_v16  ;;  %v3810_v47 = vand.u32 4294901760, %v2921_v53  ;;  %v3815_v53 = vand.u32 4294901760, %v2975_v18  ;;  %v3822_v18 = vand.u32 4294901760, %v3137_v21  ;;  %v3827_v21 = vld [vmem:[#allocation18_spill] sm:$0xff] }
  0xc6   :  { %2181 = vmatprep.subr.mxu0 %v3806_v7  ;;  %2171 = vmatpush3.msra.mxu1 %v3228_v42  ;;  %v3828_v41 = vand.u32 4294901760, %v3827_v21 }
  0xc7   :  { %2182 = vmatpush3.msra.mxu0 %v3807_v17  ;;  %2172 = vmatprep.subr.mxu1 %v3235_v3 }
  0xc8   :  { %2183 = vmatprep.subr.mxu0 %v3808_v31  ;;  %2173 = vmatpush3.msra.mxu1 %v3242_v36 }
  0xc9   :  { %1540 = vmatprep.mubr.f32.mxu1 %v3809_v60  ;;  %2184 = vmatpush3.msra.mxu0 %v3810_v47 }
  0xca   :  { %1544 = vmatmul.mubr.f32.vlgmr.msra.gmra.mxu1 %v3811_v56  ;;  %2185 = vmatprep.subr.mxu0 %v3812_v19 }
  0xcb   :  { %2212 = vmatprep.subr.mxu1 %v2845_v11  ;;  %2186 = vmatpush3.msra.mxu0 %v3813_v29  ;;  %v3817_v11 = vand.u32 4294901760, %v3782_v9 }
  0xcc   :  { %2213 = vmatpush3.msra.mxu1 %v2840_v48  ;;  %2187 = vmatprep.subr.mxu0 %v3814_v59  ;;  %v3818_v48 = vand.u32 4294901760, %v3784_v52 }
  0xcd   :  { %2214 = vmatprep.subr.mxu1 %v2861_v20  ;;  %2188 = vmatpush3.msra.mxu0 %v3815_v53  ;;  %v3819_v20 = vand.u32 4294901760, %v3786_v13 }
  0xce   :  { %2215 = vmatpush3.msra.mxu1 %v3780_v4  ;;  %2189 = vmatprep.subr.mxu0 %v3816_v10 }
  0xcf   :  { %2216 = vmatprep.subr.mxu1 %v3781_v14  ;;  %2190 = vmatpush3.msra.mxu0 %v3817_v11 }
  0xd0   :  { %2217 = vmatpush3.msra.mxu1 %v3783_v39  ;;  %2191 = vmatprep.subr.mxu0 %v3818_v48 }
  0xd1   :  { %2218 = vmatprep.subr.mxu1 %v3785_v32  ;;  %2192 = vmatpush3.msra.mxu0 %v3819_v20 }
  0xd2   :  { %2219 = vmatpush3.msra.mxu1 %v3787_v23  ;;  %2193 = vmatprep.subr.mxu0 %v3820_v15 }
  0xd3   :  { %2220 = vmatprep.subr.mxu1 %v3788_v63  ;;  %2194 = vmatpush3.msra.mxu0 %v3821_v61 }
  0xd4   :  { %2221 = vmatpush3.msra.mxu1 %v3789_v46  ;;  %2195 = vmatprep.subr.mxu0 %v3822_v18 }
  0xd5   :  { %2222 = vmatprep.subr.mxu1 %v3790_v5  ;;  %2196 = vmatpush3.msra.mxu0 %v3823_v27 }
  0xd6   :  { %2223 = vmatpush3.msra.mxu1 %v3791_v30  ;;  %2197 = vmatprep.subr.mxu0 %v3824_v62 }
  0xd7   :  { %2224 = vmatprep.subr.mxu1 %v3792_v44  ;;  %2198 = vmatpush3.msra.mxu0 %v3825_v34 }
  0xd8   :  { %2225 = vmatpush3.msra.mxu1 %v3793_v37  ;;  %2199 = vmatprep.subr.mxu0 %v3826_v38 }
  0xd9   :  { %2226 = vmatprep.subr.mxu1 %v3794_v33  ;;  %2200 = vmatpush3.msra.mxu0 %v3828_v41 }
  0xda   :  { %2227 = vmatpush3.msra.mxu1 %v3795_v2  ;;  %2201 = vmatprep.subr.mxu0 %v3829_v51 }
  0xdb   :  { %2228 = vmatprep.subr.mxu1 %v3796_v0  ;;  %2202 = vmatpush3.msra.mxu0 %v3830_v55  ;;  %v3837_v0 = vld [vmem:[#allocation32_spill] sm:$0xff] }
  0xdc   :  { %2229 = vmatpush3.msra.mxu1 %v3797_v12  ;;  %2203 = vmatprep.subr.mxu0 %v3831_v57  ;;  %v3838_v58 = vand.u32 4294901760, %v3837_v0  ;;  %v3841_v12 = vld [vmem:[#allocation29_spill] sm:$0xff] }
  0xdd   :  { %2230 = vmatprep.subr.mxu1 %v3798_v43  ;;  %2204 = vmatpush3.msra.mxu0 %v3832_v35  ;;  %v3839_v43 = vld [vmem:[#allocation33_spill] sm:$0xff] }
  0xde   :  { %2231 = vmatpush3.msra.mxu1 %v3799_v45  ;;  %2205 = vmatprep.subr.mxu0 %v3833_v25  ;;  %v3840_v50 = vand.u32 4294901760, %v3839_v43  ;;  %v3842_v45 = vld [vmem:[#allocation17_spill] sm:$0xff] }
  0xdf   :  { %2232 = vmatprep.subr.mxu1 %v3834_v54  ;;  %2206 = vmatpush3.msra.mxu0 %v3835_v22 }
  0xe0   :  { %2233 = vmatpush3.msra.mxu1 %v3836_v40  ;;  %2207 = vmatprep.subr.mxu0 %v3838_v58 }
  0xe1   :  { %2234 = vmatprep.subr.mxu1 %v3106_v24  ;;  %2208 = vmatpush3.msra.mxu0 %v3840_v50 }
  0xe2   :  { %1710 = vmatprep.mubr.f32.mxu0 %v3841_v12  ;;  %2235 = vmatpush3.msra.mxu1 %v3842_v45 }
  0xe3   :  { %1712 = vmatmul.mubr.f32.vlgmr.msra.gmra.mxu0 %v3843_v28  ;;  %2236 = vmatprep.subr.mxu1 %v3162_v6 }
  0xe4   :  { %1814 = vmatprep.mubr.f32.mxu1 %v3841_v12  ;;  %2237 = vmatpush3.msra.mxu1 %v3147_v26 }
  0xe5   :  { %2238 = vmatprep.subr.mxu1 %v3803_v49 }
  0xe6   :  { %2239 = vmatpush3.msra.mxu1 %v3185_v1 }
  0xe7   :  { %2240 = vmatprep.subr.mxu1 %v3206_v16 }
  0xe8   :  { %2241 = vmatpush3.msra.mxu1 %v3228_v42 }
  0xe9   :  { %2242 = vmatprep.subr.mxu1 %v3235_v3 }
  0xea   :  { %2243 = vmatpush3.msra.mxu1 %v3242_v36 }
  0xeb   :  { %1816 = vmatmul.mubr.f32.vlgmr.msra.gmra.mxu1 %v3843_v28 }
  0xfa   :  { %v1859_v24 = vpop.f32.mrf.mxu0 }
  0xfc   :  { %v1860_v6 = vpop.f32.mrf.mxu0 }
  0xfd   :  { %v1861_v13 = vadd.f32 %v1860_v6, %v1859_v24 }
 0x101   :  { %v1894_v8 = vpop.f32.mrf.mxu1 }
 0x103   :  { %v1895_v14 = vpop.f32.mrf.mxu1 }
 0x104   :  { %v1896_v32 = vadd.f32 %v1895_v14, %v1894_v8 }
 0x106   :  { %v438_v63 = vadd.f32 %v1896_v32, %v1861_v13 }
 0x11a   :  { %v1929_v4 = vpop.f32.mrf.mxu0 }
 0x11c   :  { %v1930_v26 = vpop.f32.mrf.mxu0 }
 0x11d   :  { %v1931_v3 = vadd.f32 %v1930_v26, %v1929_v4 }
 0x11f   :  { %v576_v30 = vadd.f32 %v1931_v3, %v438_v63 }
 0x123   :  { %v1964_v9 = vpop.f32.mrf.mxu1 }
 0x125   :  { %v1965_v39 = vpop.f32.mrf.mxu1 }
 0x126   :  { %v1966_v46 = vadd.f32 %v1965_v39, %v1964_v9 }
 0x128   :  { %v684_v33 = vadd.f32 %v1966_v46, %v576_v30 }
 0x13c   :  { %v1999_v49 = vpop.f32.mrf.mxu0 }
 0x13e   :  { %v2000_v1 = vpop.f32.mrf.mxu0 }
 0x13f   :  { %v2001_v44 = vadd.f32 %v2000_v1, %v1999_v49 }
 0x141   :  { %v852_v31 = vadd.f32 %v2001_v44, %v684_v33 }
 0x145   :  { %v2034_v52 = vpop.f32.mrf.mxu1 }
 0x147   :  { %v2035_v42 = vpop.f32.mrf.mxu1 }
 0x148   :  { %v2036_v2 = vadd.f32 %v2035_v42, %v2034_v52 }
 0x14a   :  { %v956_v56 = vadd.f32 %v2036_v2, %v852_v31 }
 0x15f   :  { %v2069_v16 = vpop.f32.mrf.mxu0 }
 0x161   :  { %v2070_v23 = vpop.f32.mrf.mxu0 }
 0x162   :  { %v2071_v60 = vadd.f32 %v2070_v23, %v2069_v16 }
 0x164   :  { %v1068_v59 = vadd.f32 %v2071_v60, %v956_v56 }
 0x168   :  { %v2104_v36 = vpop.f32.mrf.mxu1 }
 0x16a   :  { %v2105_v37 = vpop.f32.mrf.mxu1 }
 0x16b   :  { %v2106_v19 = vadd.f32 %v2105_v37, %v2104_v36 }
 0x16d   :  { %v1300_v11 = vadd.f32 %v2106_v19, %v1068_v59 }
 0x181   :  { %v2139_v5 = vpop.f32.mrf.mxu0 }
 0x183   :  { %v2140_v7 = vpop.f32.mrf.mxu0 }
 0x184   :  { %v2141_v53 = vadd.f32 %v2140_v7, %v2139_v5 }
 0x186   :  { %v1438_v20 = vadd.f32 %v2141_v53, %v1300_v11 }
 0x18a   :  { %v2174_v17 = vpop.f32.mrf.mxu1 }
 0x18c   :  { %v2175_v29 = vpop.f32.mrf.mxu1 }
 0x18d   :  { %v2176_v48 = vadd.f32 %v2175_v29, %v2174_v17 }
 0x18f   :  { %v1546_v18 = vadd.f32 %v2176_v48, %v1438_v20 }
 0x1a3   :  { %v2209_v47 = vpop.f32.mrf.mxu0 }
 0x1a5   :  { %v2210_v10 = vpop.f32.mrf.mxu0 }
 0x1a6   :  { %v2211_v15 = vadd.f32 %v2210_v10, %v2209_v47 }
 0x1a8   :  { %v1714_v62 = vadd.f32 %v2211_v15, %v1546_v18 }
 0x1ab   :  { %v2244_v61 = vpop.f32.mrf.mxu1 }
 0x1ad   :  { %v2245_v27 = vpop.f32.mrf.mxu1 }
 0x1ae   :  { %v2246_v34 = vadd.f32 %v2245_v27, %v2244_v61 }
 0x1b0   :  { %v1818_v38 = vadd.f32 %v2246_v34, %v1714_v62 }
 0x1b2   :  { %1821 = vst [vmem:[%s3493_s2] sm:$0xf] %v1818_v38 }
 0x1b3   :  { %1826 = vsyncpa [#allocation3], 1 }

</bundles_post_ra>
